<compile_context>
chip_gen: v6e
topology: v6e:2x2x1
jax: 0.10.0
libtpu: 0.0.40
codegen_flags: <defaults>
</compile_context>

<pallas_src>
import jax
import jax.numpy as jnp
from jax.experimental import pallas as pl
from jax.experimental.pallas import tpu as pltpu


def rnn_kernel(ids_ref, tbl_ref, bias_ref, out_ref):
    """Single grid point; everything VMEM resident.

    ids_ref  : VMEM int32 [B, T]     token ids
    tbl_ref  : VMEM f32   [T*V, O]   fused (embedding x i2h/i2o x W-powers) table
    bias_ref : VMEM f32   [1, O]     fused output bias
    out_ref  : VMEM f32   [B, O]     log-probabilities
    """
    B, T = ids_ref.shape
    TV, _ = tbl_ref.shape
    V = TV // T

    # ---- One-hot "gather" (review item 1) -----------------------------------
    # Column c = t*V + v is hot for batch row b iff ids[b, t] == v.
    ids = ids_ref[...]                                                   # [B, T]
    tgt = ids + jax.lax.broadcasted_iota(jnp.int32, (B, T), 1) * V       # [B, T]
    col = jax.lax.broadcasted_iota(jnp.int32, (B, TV), 1)                # [B, T*V]
    hit = col == tgt[:, 0:1]
    for t in range(1, T):                                                # T VPU compares
        hit = jnp.logical_or(hit, col == tgt[:, t:t + 1])
    onehot = hit.astype(jnp.float32)                                     # [B, T*V]

    # ---- ONE MXU call replaces gather + i2h/i2o projections + the entire ----
    # ---- serial hidden recurrence (review item 2: W powers baked into tbl). --
    logits = jnp.dot(onehot, tbl_ref[...],
                     preferred_element_type=jnp.float32) + bias_ref[...]  # [B, O]

    # ---- LogSoftmax(dim=-1), max-shifted for stability. ----------------------
    # TODO(synk): if O grows, pad it to a multiple of 128 (mask the pad lanes to
    # -inf before the reduce) so the reductions/store run lane-dense.
    m = jnp.max(logits, axis=-1, keepdims=True)
    shifted = logits - m
    lse = jnp.log(jnp.sum(jnp.exp(shifted), axis=-1, keepdims=True))
    out_ref[...] = (shifted - lse).astype(out_ref.dtype)


def prepare_params(embed_table, w_ih, b_ih, w_io, b_io, seq_len):
    """One-time parameter preprocessing (hoisted out of the per-call path).

    Exploits that the recurrence is affine:
        h_{T-2} = sum_{t=0}^{T-2} (e_t @ wih_e + bih) @ W^(T-2-t),  W = wih_h
        logits  = e_{T-1} @ wio_e + h_{T-2} @ wio_h + bio
    and folds everything that does not depend on the token ids into
        full_tbl [T*V, O]  (block t = emb_tbl @ wih_e @ W^(T-2-t) @ wio_h,
                            block T-1 = emb_tbl @ wio_e)
        bias     [1, O]    (= bih @ (sum_k W^k) @ wio_h + bio).
    The sequence length is baked in (the forward's recurrence depth).
    """
    T = int(seq_len)
    E = embed_table.shape[1]
    H = b_ih.shape[0]
    O = b_io.shape[0]

    emb = embed_table.astype(jnp.float32)                     # [V, E]
    w_ih_t = jnp.transpose(w_ih).astype(jnp.float32)          # [E+H, H]  (in, out)
    w_io_t = jnp.transpose(w_io).astype(jnp.float32)          # [E+H, O]
    wih_e, wih_h = w_ih_t[:E], w_ih_t[E:]                     # [E, H], [H, H]
    wio_e, wio_h = w_io_t[:E], w_io_t[E:]                     # [E, O], [H, O]
    bih = b_ih.reshape(1, H).astype(jnp.float32)
    bio = b_io.reshape(1, O).astype(jnp.float32)

    # powers[p] = wih_h^p for p = 0 .. T-2
    powers = [jnp.eye(H, dtype=jnp.float32)]
    for _ in range(max(T - 2, 0)):
        powers.append(powers[-1] @ wih_h)

    emb_ih = emb @ wih_e                                       # [V, H]
    blocks = []
    for t in range(T - 1):
        blocks.append(emb_ih @ (powers[T - 2 - t] @ wio_h))    # [V, O]
    blocks.append(emb @ wio_e)                                 # last token (i2o emb part)
    full_tbl = jnp.concatenate(blocks, axis=0)                 # [T*V, O]

    if T >= 2:
        sum_pow = powers[0]
        for p in range(1, T - 1):
            sum_pow = sum_pow + powers[p]
        bias = bih @ (sum_pow @ wio_h) + bio                   # [1, O]
    else:
        bias = bio

    # TODO(synk): if V or O grow, store full_tbl in bf16 (f32 MXU accumulation)
    # to halve the HBM->VMEM DMA / vreg footprint, esp. on v7x's 64 MiB VMEM.
    return full_tbl, bias


@jax.jit
def rnn_forward(batch_x, params):
    """batch_x: int32 [B, T] token ids; params from prepare_params()."""
    full_tbl, bias = params
    B = batch_x.shape[0]
    O = bias.shape[1]

    vmem = pl.BlockSpec(memory_space=pltpu.MemorySpace.VMEM)
    # TODO(synk): for large B, add a batch grid axis with
    # dimension_semantics=("parallel",) so v7x's two TensorCores split it;
    # at B=2 a single grid point is the lower-overhead choice.
    return pl.pallas_call(
        rnn_kernel,
        out_shape=jax.ShapeDtypeStruct((B, O), jnp.float32),
        in_specs=[vmem, vmem, vmem],
        out_specs=vmem,
    )(batch_x.astype(jnp.int32), full_tbl, bias)


def rnn_forward_ref(batch_x, embed_table, w_ih, b_ih, w_io, b_io):
    """Pure-JAX reference mirroring the PyTorch forward."""
    B, T = batch_x.shape
    H = b_ih.shape[0]
    hidden = jnp.zeros((B, H), jnp.float32)
    combined = None
    for t in range(T):
        e = jnp.take(embed_table, batch_x[:, t], axis=0)
        combined = jnp.concatenate([e, hidden], axis=1)
        hidden = combined @ w_ih.T + b_ih
    logits = combined @ w_io.T + b_io
    return jax.nn.log_softmax(logits, axis=-1)


if __name__ == "__main__":
    # Small, deterministic configuration.
    B, T = 2, 8
    vocab_size = 100        # len(model_configs['vocab'].vocab)
    embed_len = 32          # input_size
    hidden_size = 32
    output_size = 4         # len(model_configs['target_classes'].vocab)

    key = jax.random.PRNGKey(0)
    k0, k1, k2, k3, k4, k5 = jax.random.split(key, 6)

    embed_table = jax.random.normal(k0, (vocab_size, embed_len), jnp.float32) * 0.1
    w_ih = jax.random.normal(k1, (hidden_size, embed_len + hidden_size), jnp.float32) * 0.1
    b_ih = jax.random.normal(k2, (hidden_size,), jnp.float32) * 0.1
    w_io = jax.random.normal(k3, (output_size, embed_len + hidden_size), jnp.float32) * 0.1
    b_io = jax.random.normal(k4, (output_size,), jnp.float32) * 0.1

    batch_x = jax.random.randint(k5, (B, T), 0, vocab_size, dtype=jnp.int32)

    params = jax.tree.map(jax.block_until_ready,
                          prepare_params(embed_table, w_ih, b_ih, w_io, b_io, T))

    out = jax.block_until_ready(rnn_forward(batch_x, params))

    ref = rnn_forward_ref(batch_x, embed_table, w_ih, b_ih, w_io, b_io)
    assert out.shape == (B, output_size)
    assert jnp.allclose(out, ref, atol=1e-4, rtol=1e-4), (out, ref)

    print("KERNEL_OK")
</pallas_src>

<mosaic_0001>
module attributes {stable_mosaic.version = 11 : i64} {
  func.func @rnn_kernel(%arg0: memref<2x8xi32, #tpu.memory_space<vmem>>, %arg1: memref<800x4xf32, #tpu.memory_space<vmem>>, %arg2: memref<1x4xf32, #tpu.memory_space<vmem>>, %arg3: memref<2x4xf32, #tpu.memory_space<vmem>>) attributes {dimension_semantics = [], scalar_prefetch = 0 : i64, scratch_operands = 0 : i64, tpu.core_type = #tpu.core_type<tc>} {
    %c0 = arith.constant 0 : index
    %c0_0 = arith.constant 0 : index
    %0 = vector.load %arg0[%c0, %c0_0] : memref<2x8xi32, #tpu.memory_space<vmem>>, vector<2x8xi32>
    %1 = tpu.iota {dimensions = array<i32: 1>} : vector<2x8xi32>
    %c100_i32 = arith.constant 100 : i32
    %2 = vector.broadcast %c100_i32 : i32 to vector<2x8xi32>
    %3 = arith.muli %1, %2 : vector<2x8xi32>
    %4 = arith.addi %0, %3 : vector<2x8xi32>
    %5 = tpu.iota {dimensions = array<i32: 1>} : vector<2x800xi32>
    %6 = vector.extract_strided_slice %4 {offsets = [0, 0], sizes = [2, 1], strides = [1, 1]} : vector<2x8xi32> to vector<2x1xi32>
    %7 = vector.broadcast %6 : vector<2x1xi32> to vector<2x800xi32>
    %8 = arith.cmpi eq, %5, %7 : vector<2x800xi32>
    %9 = vector.extract_strided_slice %4 {offsets = [0, 1], sizes = [2, 1], strides = [1, 1]} : vector<2x8xi32> to vector<2x1xi32>
    %10 = vector.broadcast %9 : vector<2x1xi32> to vector<2x800xi32>
    %11 = arith.cmpi eq, %5, %10 : vector<2x800xi32>
    %12 = arith.ori %8, %11 : vector<2x800xi1>
    %13 = vector.extract_strided_slice %4 {offsets = [0, 2], sizes = [2, 1], strides = [1, 1]} : vector<2x8xi32> to vector<2x1xi32>
    %14 = vector.broadcast %13 : vector<2x1xi32> to vector<2x800xi32>
    %15 = arith.cmpi eq, %5, %14 : vector<2x800xi32>
    %16 = arith.ori %12, %15 : vector<2x800xi1>
    %17 = vector.extract_strided_slice %4 {offsets = [0, 3], sizes = [2, 1], strides = [1, 1]} : vector<2x8xi32> to vector<2x1xi32>
    %18 = vector.broadcast %17 : vector<2x1xi32> to vector<2x800xi32>
    %19 = arith.cmpi eq, %5, %18 : vector<2x800xi32>
    %20 = arith.ori %16, %19 : vector<2x800xi1>
    %21 = vector.extract_strided_slice %4 {offsets = [0, 4], sizes = [2, 1], strides = [1, 1]} : vector<2x8xi32> to vector<2x1xi32>
    %22 = vector.broadcast %21 : vector<2x1xi32> to vector<2x800xi32>
    %23 = arith.cmpi eq, %5, %22 : vector<2x800xi32>
    %24 = arith.ori %20, %23 : vector<2x800xi1>
    %25 = vector.extract_strided_slice %4 {offsets = [0, 5], sizes = [2, 1], strides = [1, 1]} : vector<2x8xi32> to vector<2x1xi32>
    %26 = vector.broadcast %25 : vector<2x1xi32> to vector<2x800xi32>
    %27 = arith.cmpi eq, %5, %26 : vector<2x800xi32>
    %28 = arith.ori %24, %27 : vector<2x800xi1>
    %29 = vector.extract_strided_slice %4 {offsets = [0, 6], sizes = [2, 1], strides = [1, 1]} : vector<2x8xi32> to vector<2x1xi32>
    %30 = vector.broadcast %29 : vector<2x1xi32> to vector<2x800xi32>
    %31 = arith.cmpi eq, %5, %30 : vector<2x800xi32>
    %32 = arith.ori %28, %31 : vector<2x800xi1>
    %33 = vector.extract_strided_slice %4 {offsets = [0, 7], sizes = [2, 1], strides = [1, 1]} : vector<2x8xi32> to vector<2x1xi32>
    %34 = vector.broadcast %33 : vector<2x1xi32> to vector<2x800xi32>
    %35 = arith.cmpi eq, %5, %34 : vector<2x800xi32>
    %36 = arith.ori %32, %35 : vector<2x800xi1>
    %37 = arith.extui %36 : vector<2x800xi1> to vector<2x800xi32>
    %38 = arith.sitofp %37 : vector<2x800xi32> to vector<2x800xf32>
    %c0_1 = arith.constant 0 : index
    %c0_2 = arith.constant 0 : index
    %39 = vector.load %arg1[%c0_1, %c0_2] : memref<800x4xf32, #tpu.memory_space<vmem>>, vector<800x4xf32>
    %cst = arith.constant dense<0.000000e+00> : vector<2x4xf32>
    %40 = tpu.matmul %38, %39, %cst {dimension_numbers = #tpu.dot_dimension_numbers<[1], [0], [0], [1], [0, 0, 1, 1], [], []>} : vector<2x800xf32>, vector<800x4xf32>, vector<2x4xf32> -> vector<2x4xf32>
    %c0_3 = arith.constant 0 : index
    %c0_4 = arith.constant 0 : index
    %41 = vector.load %arg2[%c0_3, %c0_4] : memref<1x4xf32, #tpu.memory_space<vmem>>, vector<1x4xf32>
    %42 = vector.broadcast %41 : vector<1x4xf32> to vector<2x4xf32>
    %43 = arith.addf %40, %42 : vector<2x4xf32>
    %cst_5 = arith.constant dense<0xFF800000> : vector<2xf32>
    %44 = vector.multi_reduction <maximumf>, %43, %cst_5 [1] : vector<2x4xf32> to vector<2xf32>
    %45 = vector.shape_cast %44 : vector<2xf32> to vector<2x1xf32>
    %46 = vector.broadcast %45 : vector<2x1xf32> to vector<2x4xf32>
    %47 = arith.subf %43, %46 : vector<2x4xf32>
    %48 = math.exp %47 : vector<2x4xf32>
    %cst_6 = arith.constant dense<0.000000e+00> : vector<2xf32>
    %49 = vector.multi_reduction <add>, %48, %cst_6 [1] : vector<2x4xf32> to vector<2xf32>
    %50 = vector.shape_cast %49 : vector<2xf32> to vector<2x1xf32>
    %51 = math.log %50 : vector<2x1xf32>
    %52 = vector.broadcast %51 : vector<2x1xf32> to vector<2x4xf32>
    %53 = arith.subf %47, %52 : vector<2x4xf32>
    %c0_7 = arith.constant 0 : index
    %c0_8 = arith.constant 0 : index
    %54 = vector.load %arg3[%c0_7, %c0_8] : memref<2x4xf32, #tpu.memory_space<vmem>>, vector<2x4xf32>
    tpu.vector_store %arg3[%c0_7, %c0_8], %53 {strides = array<i32>} : memref<2x4xf32, #tpu.memory_space<vmem>>, vector<2x4xf32>,
    return
  }
}

</mosaic_0001>

<bundles_post_ra>
// kernel: rnn_forward.1
= control target key start
LH: loop header
LB: loop body
LE: loop exit
PB: predicated region body
PF: predicated region fallthrough
CT: control target
= control target key end

     0   :  { %v16_v0 = vlaneseq  ;;  %v764_v2 = vmov 2   ;;  %v765_v3 = vmov 0   ;;  %v766_v27 = vmov 3   ;;  %s1226_s0 = inlined_call_operand.vmem [shape: s32[2,8], index: 0, kind: input, shape index: {}]   ;;  %s1227_s1 = inlined_call_operand.vmem [shape: f32[800,4], index: 1, kind: input, shape index: {}]   ;;  %s1228_s2 = inlined_call_operand.vmem [shape: f32[1,4], index: 2, kind: input, shape index: {}]   ;;  %s1229_s3 = inlined_call_operand.hbm [shape: f32[2,4], index: 3, kind: output, shape index: {}]  }
   0x1   :  { %v200_v1 = vld [vmem:[%s1227_s1 + $0xf8] sm:$0xff]  ;;  %731 = vset.pattern.permute.xlu1 %v764_v2  ;;  %729 = vset.pattern.permute.xlu0 %v765_v3  ;;  %v15_v4 = vld [vmem:[%s1226_s0] sm:$0x3]  ;;  %v199_v9 = vld [vmem:[%s1227_s1 + $0xf0] sm:$0xff]  ;;  %v767_v28 = vmov 1   ;;  %v768_v35 = vmov 4  }
   0x2   :  { %v232_v5 = vld [vmem:[%s1227_s1 + $0x1f8] sm:$0xff]  ;;  %v807_v7 = vand.u32 127, %v16_v0  ;;  %597 = vmatprep.subr.mxu0 %v200_v1  ;;  %v231_v10 = vld [vmem:[%s1227_s1 + $0x1f0] sm:$0xff]  ;;  %v198_v13 = vld [vmem:[%s1227_s1 + $0xe8] sm:$0xff]  ;;  %v769_v36 = vmov 5  }
   0x3   :  { %v184_v6 = vld [vmem:[%s1227_s1 + $0x78] sm:$0xff]  ;;  %632 = vmatprep.subr.mxu1 %v232_v5  ;;  %v183_v11 = vld [vmem:[%s1227_s1 + $0x70] sm:$0xff]  ;;  %v230_v15 = vld [vmem:[%s1227_s1 + $0x1e8] sm:$0xff] }
   0x4   :  { %v216_v8 = vld [vmem:[%s1227_s1 + $0x178] sm:$0xff]  ;;  %598 = vmatpush3.msra.mxu0 %v184_v6  ;;  %v215_v12 = vld [vmem:[%s1227_s1 + $0x170] sm:$0xff]  ;;  %v18_v14 = vmul.u32 100, %v807_v7  ;;  %v182_v16 = vld [vmem:[%s1227_s1 + $0x68] sm:$0xff] }
   0x5   :  { %633 = vmatpush3.msra.mxu1 %v216_v8  ;;  %599 = vmatprep.subr.mxu0 %v199_v9  ;;  %v214_v17 = vld [vmem:[%s1227_s1 + $0x168] sm:$0xff]  ;;  %v197_v19 = vld [vmem:[%s1227_s1 + $0xe0] sm:$0xff]  ;;  %v196_v23 = vld [vmem:[%s1227_s1 + $0xd8] sm:$0xff] }
   0x6   :  { %634 = vmatprep.subr.mxu1 %v231_v10  ;;  %600 = vmatpush3.msra.mxu0 %v183_v11  ;;  %v837_v18 = vadd.s32 %v18_v14, %v15_v4  ;;  %v229_v20 = vld [vmem:[%s1227_s1 + $0x1e0] sm:$0xff]  ;;  %v228_v24 = vld [vmem:[%s1227_s1 + $0x1d8] sm:$0xff]  ;;  %v195_v29 = vld [vmem:[%s1227_s1 + $0xd0] sm:$0xff] }
   0x7   :  { %635 = vmatpush3.msra.mxu1 %v215_v12  ;;  %601 = vmatprep.subr.mxu0 %v198_v13  ;;  %v181_v21 = vld [vmem:[%s1227_s1 + $0x60] sm:$0xff]  ;;  %v180_v25 = vld [vmem:[%s1227_s1 + $0x58] sm:$0xff]  ;;  %v227_v30 = vld [vmem:[%s1227_s1 + $0x1d0] sm:$0xff] }
   0x8   :  { %636 = vmatprep.subr.mxu1 %v230_v15  ;;  %602 = vmatpush3.msra.mxu0 %v182_v16  ;;  %v213_v22 = vld [vmem:[%s1227_s1 + $0x160] sm:$0xff]  ;;  %v212_v26 = vld [vmem:[%s1227_s1 + $0x158] sm:$0xff]  ;;  %v179_v31 = vld [vmem:[%s1227_s1 + $0x50] sm:$0xff] }
   0x9   :  { %637 = vmatpush3.msra.mxu1 %v214_v17  ;;  %54 = vperm.xlu1 %731, %v837_v18   ;;  %v211_v32 = vld [vmem:[%s1227_s1 + $0x150] sm:$0xff]  ;;  %v194_v33 = vld [vmem:[%s1227_s1 + $0xc8] sm:$0xff] }
   0xa   :  { %27 = vperm.xlu0 %729, %v837_v18   ;;  %603 = vmatprep.subr.mxu0 %v197_v19  ;;  %v226_v34 = vld [vmem:[%s1227_s1 + $0x1c8] sm:$0xff] }
   0xb   :  { %638 = vmatprep.subr.mxu1 %v229_v20  ;;  %604 = vmatpush3.msra.mxu0 %v181_v21  ;;  %v178_v37 = vld [vmem:[%s1227_s1 + $0x48] sm:$0xff] }
   0xc   :  { %639 = vmatpush3.msra.mxu1 %v213_v22  ;;  %605 = vmatprep.subr.mxu0 %v196_v23  ;;  %v210_v38 = vld [vmem:[%s1227_s1 + $0x148] sm:$0xff] }
   0xd   :  { %640 = vmatprep.subr.mxu1 %v228_v24  ;;  %732 = vset.pattern.permute.xlu1 %v766_v27 }
   0xe   :  { %730 = vset.pattern.permute.xlu0 %v767_v28  ;;  %71 = vperm.xlu1 %732, %v837_v18  }
   0xf   :  { %37 = vperm.xlu0 %730, %v837_v18   ;;  %606 = vmatpush3.msra.mxu0 %v180_v25 }
  0x10   :  { %641 = vmatpush3.msra.mxu1 %v212_v26  ;;  %607 = vmatprep.subr.mxu0 %v195_v29 }
  0x11   :  { %642 = vmatprep.subr.mxu1 %v227_v30  ;;  %608 = vmatpush3.msra.mxu0 %v179_v31 }
  0x12   :  { %643 = vmatpush3.msra.mxu1 %v211_v32  ;;  %733 = vset.pattern.permute.xlu1 %v768_v35 }
  0x13   :  { %734 = vset.pattern.permute.xlu0 %v769_v36 }
  0x14   :  { %8 = vsyncpa [#allocation3], 0  ;;  %88 = vperm.xlu1 %733, %v837_v18   ;;  %105 = vperm.xlu0 %734, %v837_v18   ;;  %v193_v39 = vld [vmem:[%s1227_s1 + $0xc0] sm:$0xff]  ;;  %v192_v43 = vld [vmem:[%s1227_s1 + $0xb8] sm:$0xff]  ;;  %v770_v45 = vmov 6   ;;  %v771_v54 = vmov 7  }
  0x15   :  { %v225_v40 = vld [vmem:[%s1227_s1 + $0x1c0] sm:$0xff]  ;;  %609 = vmatprep.subr.mxu0 %v194_v33  ;;  %644 = vmatprep.subr.mxu1 %v226_v34  ;;  %v224_v44 = vld [vmem:[%s1227_s1 + $0x1b8] sm:$0xff]  ;;  %v191_v48 = vld [vmem:[%s1227_s1 + $0xb0] sm:$0xff]  ;;  %v772_v15 = vmov 0.0   ;;  %v22_v21 = vadd.s32 384, %v807_v7  ;;  %v21_v27 = vadd.s32 256, %v807_v7 }
  0x16   :  { %v177_v41 = vld [vmem:[%s1227_s1 + $0x40] sm:$0xff]  ;;  %610 = vmatpush3.msra.mxu0 %v178_v37  ;;  %645 = vmatpush3.msra.mxu1 %v210_v38  ;;  %v176_v46 = vld [vmem:[%s1227_s1 + $0x38] sm:$0xff]  ;;  %v223_v49 = vld [vmem:[%s1227_s1 + $0x1b0] sm:$0xff]  ;;  %v24_v33 = vadd.s32 640, %v807_v7 }
  0x17   :  { %v209_v42 = vld [vmem:[%s1227_s1 + $0x140] sm:$0xff]  ;;  %611 = vmatprep.subr.mxu0 %v193_v39  ;;  %646 = vmatprep.subr.mxu1 %v225_v40  ;;  %v208_v47 = vld [vmem:[%s1227_s1 + $0x138] sm:$0xff]  ;;  %v175_v50 = vld [vmem:[%s1227_s1 + $0x30] sm:$0xff] }
  0x18   :  { %735 = vset.pattern.permute.xlu1 %v770_v45  ;;  %612 = vmatpush3.msra.mxu0 %v177_v41  ;;  %v207_v51 = vld [vmem:[%s1227_s1 + $0x130] sm:$0xff]  ;;  %v190_v52 = vld [vmem:[%s1227_s1 + $0xa8] sm:$0xff]  ;;  %v189_v57 = vld [vmem:[%s1227_s1 + $0xa0] sm:$0xff] }
  0x19   :  { %122 = vperm.xlu1 %735, %v837_v18   ;;  %647 = vmatpush3.msra.mxu1 %v209_v42  ;;  %v222_v53 = vld [vmem:[%s1227_s1 + $0x1a8] sm:$0xff]  ;;  %v221_v58 = vld [vmem:[%s1227_s1 + $0x1a0] sm:$0xff]  ;;  %v188_v61 = vld [vmem:[%s1227_s1 + $0x98] sm:$0xff] }
  0x1a   :  { %613 = vmatprep.subr.mxu0 %v192_v43  ;;  %648 = vmatprep.subr.mxu1 %v224_v44  ;;  %v174_v55 = vld [vmem:[%s1227_s1 + $0x28] sm:$0xff]  ;;  %v173_v59 = vld [vmem:[%s1227_s1 + $0x20] sm:$0xff]  ;;  %v220_v62 = vld [vmem:[%s1227_s1 + $0x198] sm:$0xff]  ;;  %v25_v43 = vadd.s32 768, %v807_v7 }
  0x1b   :  { %614 = vmatpush3.msra.mxu0 %v176_v46  ;;  %649 = vmatpush3.msra.mxu1 %v208_v47  ;;  %v206_v56 = vld [vmem:[%s1227_s1 + $0x128] sm:$0xff]  ;;  %v205_v60 = vld [vmem:[%s1227_s1 + $0x120] sm:$0xff]  ;;  %v172_v63 = vld [vmem:[%s1227_s1 + $0x18] sm:$0xff] }
  0x1c   :  { %615 = vmatprep.subr.mxu0 %v191_v48  ;;  %650 = vmatprep.subr.mxu1 %v223_v49  ;;  %v204_v0 = vld [vmem:[%s1227_s1 + $0x118] sm:$0xff]  ;;  %v187_v1 = vld [vmem:[%s1227_s1 + $0x90] sm:$0xff]  ;;  %v186_v5 = vld [vmem:[%s1227_s1 + $0x88] sm:$0xff] }
  0x1d   :  { %736 = vset.pattern.permute.xlu1 %v771_v54  ;;  %616 = vmatpush3.msra.mxu0 %v175_v50  ;;  %v219_v2 = vld [vmem:[%s1227_s1 + $0x190] sm:$0xff]  ;;  %v218_v6 = vld [vmem:[%s1227_s1 + $0x188] sm:$0xff]  ;;  %v185_v10 = vld [vmem:[%s1227_s1 + $0x80] sm:$0xff] }
  0x1e   :  { %139 = vperm.xlu1 %736, %v837_v18   ;;  %651 = vmatpush3.msra.mxu1 %v207_v51  ;;  %v171_v3 = vld [vmem:[%s1227_s1 + $0x10] sm:$0xff]  ;;  %v170_v8 = vld [vmem:[%s1227_s1 + $0x8] sm:$0xff]  ;;  %v217_v11 = vld [vmem:[%s1227_s1 + $0x180] sm:$0xff]  ;;  %v20_v18 = vadd.s32 128, %v807_v7 }
  0x1f   :  { %617 = vmatprep.subr.mxu0 %v190_v52  ;;  %652 = vmatprep.subr.mxu1 %v222_v53  ;;  %v203_v4 = vld [vmem:[%s1227_s1 + $0x110] sm:$0xff]  ;;  %v202_v9 = vld [vmem:[%s1227_s1 + $0x108] sm:$0xff]  ;;  %v169_v12 = vld [vmem:[%s1227_s1] sm:$0xff] }
  0x20   :  { %618 = vmatpush3.msra.mxu0 %v174_v55  ;;  %653 = vmatpush3.msra.mxu1 %v206_v56  ;;  %v201_v13 = vld [vmem:[%s1227_s1 + $0x100] sm:$0xff]  ;;  %v264_v14 = vld [vmem:[%s1227_s1 + $0x2f8] sm:$0xff]  ;;  %v263_v31 = vld [vmem:[%s1227_s1 + $0x2f0] sm:$0xff] }
  0x21   :  { %619 = vmatprep.subr.mxu0 %v189_v57  ;;  %654 = vmatprep.subr.mxu1 %v221_v58  ;;  %v248_v29 = vld [vmem:[%s1227_s1 + $0x278] sm:$0xff]  ;;  %v247_v32 = vld [vmem:[%s1227_s1 + $0x270] sm:$0xff]  ;;  %v262_v34 = vld [vmem:[%s1227_s1 + $0x2e8] sm:$0xff] }
  0x22   :  { %620 = vmatpush3.msra.mxu0 %v173_v59  ;;  %655 = vmatpush3.msra.mxu1 %v205_v60  ;;  %v246_v35 = vld [vmem:[%s1227_s1 + $0x268] sm:$0xff]  ;;  %v261_v36 = vld [vmem:[%s1227_s1 + $0x2e0] sm:$0xff]  ;;  %v268_v38 = vld [vmem:[%s1227_s1 + $0x318] sm:$0xff] }
  0x23   :  { %621 = vmatprep.subr.mxu0 %v188_v61  ;;  %656 = vmatprep.subr.mxu1 %v220_v62  ;;  %v245_v37 = vld [vmem:[%s1227_s1 + $0x260] sm:$0xff]  ;;  %v260_v40 = vld [vmem:[%s1227_s1 + $0x2d8] sm:$0xff]  ;;  %v267_v41 = vld [vmem:[%s1227_s1 + $0x310] sm:$0xff] }
  0x24   :  { %622 = vmatpush3.msra.mxu0 %v172_v63  ;;  %657 = vmatpush3.msra.mxu1 %v204_v0  ;;  %v244_v42 = vld [vmem:[%s1227_s1 + $0x258] sm:$0xff]  ;;  %v259_v44 = vld [vmem:[%s1227_s1 + $0x2d0] sm:$0xff]  ;;  %v266_v45 = vld [vmem:[%s1227_s1 + $0x308] sm:$0xff] }
  0x25   :  { %623 = vmatprep.subr.mxu0 %v187_v1  ;;  %658 = vmatprep.subr.mxu1 %v219_v2  ;;  %v243_v46 = vld [vmem:[%s1227_s1 + $0x250] sm:$0xff]  ;;  %v258_v47 = vld [vmem:[%s1227_s1 + $0x2c8] sm:$0xff]  ;;  %v265_v48 = vld [vmem:[%s1227_s1 + $0x300] sm:$0xff] }
  0x26   :  { %624 = vmatpush3.msra.mxu0 %v171_v3  ;;  %659 = vmatpush3.msra.mxu1 %v203_v4  ;;  %v242_v49 = vld [vmem:[%s1227_s1 + $0x248] sm:$0xff]  ;;  %v257_v51 = vld [vmem:[%s1227_s1 + $0x2c0] sm:$0xff]  ;;  %v256_v53 = vld [vmem:[%s1227_s1 + $0x2b8] sm:$0xff] }
  0x27   :  { %625 = vmatprep.subr.mxu0 %v186_v5  ;;  %660 = vmatprep.subr.mxu1 %v218_v6  ;;  %v241_v52 = vld [vmem:[%s1227_s1 + $0x240] sm:$0xff]  ;;  %v240_v55 = vld [vmem:[%s1227_s1 + $0x238] sm:$0xff]  ;;  %v255_v56 = vld [vmem:[%s1227_s1 + $0x2b0] sm:$0xff] }
  0x28   :  { %626 = vmatpush3.msra.mxu0 %v170_v8  ;;  %661 = vmatpush3.msra.mxu1 %v202_v9  ;;  %v254_v57 = vld [vmem:[%s1227_s1 + $0x2a8] sm:$0xff]  ;;  %v253_v60 = vld [vmem:[%s1227_s1 + $0x2a0] sm:$0xff]  ;;  %v252_v62 = vld [vmem:[%s1227_s1 + $0x298] sm:$0xff] }
  0x29   :  { %627 = vmatprep.subr.mxu0 %v185_v10  ;;  %662 = vmatprep.subr.mxu1 %v217_v11  ;;  %v238_v59 = vld [vmem:[%s1227_s1 + $0x228] sm:$0xff]  ;;  %v237_v61 = vld [vmem:[%s1227_s1 + $0x220] sm:$0xff]  ;;  %v236_v63 = vld [vmem:[%s1227_s1 + $0x218] sm:$0xff] }
  0x2a   :  { %628 = vmatpush3.msra.mxu0 %v169_v12  ;;  %663 = vmatpush3.msra.mxu1 %v201_v13  ;;  %v251_v0 = vld [vmem:[%s1227_s1 + $0x290] sm:$0xff]  ;;  %v250_v2 = vld [vmem:[%s1227_s1 + $0x288] sm:$0xff]  ;;  %v249_v4 = vld [vmem:[%s1227_s1 + $0x280] sm:$0xff] }
  0x2b   :  { %667 = vmatprep.subr.mxu0 %v264_v14  ;;  %707 = vmatprep.subr.mxu1 %v772_v15  ;;  %v235_v1 = vld [vmem:[%s1227_s1 + $0x210] sm:$0xff]  ;;  %v234_v3 = vld [vmem:[%s1227_s1 + $0x208] sm:$0xff]  ;;  %v233_v5 = vld [vmem:[%s1227_s1 + $0x200] sm:$0xff] }
  0x2c   :  { %737 = vset.pattern.permute.xlu0 %v771_v54  ;;  %v23_v54 = vadd.s32 512, %v807_v7 }
  0x84   :  { %v1007_v16 = vpop.permute.xlu1 %54 }
  0x85   :  { %v1009_v17 = vpop.permute.xlu0 %27  ;;  %vm57_vm3 = vcmp.eq.s32.totalorder %v20_v18, %v1007_v16  ;;  %vm59_vm10 = vcmp.eq.s32.totalorder %v22_v21, %v1007_v16 }
  0x86   :  { %vm30_vm0 = vcmp.eq.s32.totalorder %v20_v18, %v1009_v17  ;;  %vm32_vm4 = vcmp.eq.s32.totalorder %v22_v21, %v1009_v17 }
  0x89   :  { %v1013_v19 = vpop.permute.xlu1 %71 }
  0x8a   :  { %v1015_v20 = vpop.permute.xlu0 %37  ;;  %vm74_vm7 = vcmp.eq.s32.totalorder %v20_v18, %v1013_v19 }
  0x8b   :  { %vm40_vm1 = vcmp.eq.s32.totalorder %v20_v18, %v1015_v20  ;;  %vm42_vm5 = vcmp.eq.s32.totalorder %v22_v21, %v1015_v20 }
  0x8c   :  { %vm47_vm2 = vmor %vm30_vm0, %vm40_vm1  ;;  %vm76_vm1 = vcmp.eq.s32.totalorder %v22_v21, %v1013_v19 }
  0x8d   :  { %vm64_vm6 = vmor %vm47_vm2, %vm57_vm3 }
  0x8e   :  { %vm81_vm8 = vmor %vm64_vm6, %vm74_vm7 }
  0x8f   :  { %v1023_v22 = vpop.permute.xlu1 %88  ;;  %v1025_v23 = vpop.permute.xlu0 %105  ;;  %vm49_vm9 = vmor %vm32_vm4, %vm42_vm5 }
  0x90   :  { %vm91_vm11 = vcmp.eq.s32.totalorder %v20_v18, %v1023_v22  ;;  %vm108_vm12 = vcmp.eq.s32.totalorder %v20_v18, %v1025_v23  ;;  %vm66_vm13 = vmor %vm49_vm9, %vm59_vm10  ;;  %vm93_vm15 = vcmp.eq.s32.totalorder %v22_v21, %v1023_v22  ;;  %vm110_vm2 = vcmp.eq.s32.totalorder %v22_v21, %v1025_v23 }
  0x91   :  { %vm98_vm14 = vmor %vm81_vm8, %vm91_vm11  ;;  %vm29_vm9 = vcmp.eq.s32.totalorder %v807_v7, %v1009_v17  ;;  %vm39_vm8 = vcmp.eq.s32.totalorder %v807_v7, %v1015_v20 }
  0x92   :  { %vm115_vm0 = vmor %vm98_vm14, %vm108_vm12 }
  0x93   :  { %vm83_vm3 = vmor %vm66_vm13, %vm76_vm1  ;;  %vm56_vm13 = vcmp.eq.s32.totalorder %v807_v7, %v1007_v16 }
  0x94   :  { %v1033_v24 = vpop.permute.xlu1 %122  ;;  %vm100_vm6 = vmor %vm83_vm3, %vm93_vm15  ;;  %vm73_vm15 = vcmp.eq.s32.totalorder %v807_v7, %v1013_v19 }
  0x95   :  { %vm125_vm4 = vcmp.eq.s32.totalorder %v20_v18, %v1033_v24  ;;  %vm117_vm5 = vmor %vm100_vm6, %vm110_vm2  ;;  %vm127_vm7 = vcmp.eq.s32.totalorder %v22_v21, %v1033_v24  ;;  %vm90_vm6 = vcmp.eq.s32.totalorder %v807_v7, %v1023_v22 }
  0x96   :  { %vm132_vm10 = vmor %vm115_vm0, %vm125_vm4  ;;  %vm107_vm4 = vcmp.eq.s32.totalorder %v807_v7, %v1025_v23 }
  0x97   :  { %vm134_vm11 = vmor %vm117_vm5, %vm127_vm7  ;;  %vm124_vm7 = vcmp.eq.s32.totalorder %v807_v7, %v1033_v24 }
  0x98   :  { %vm46_vm12 = vmor %vm29_vm9, %vm39_vm8 }
  0x99   :  { %v1043_v25 = vpop.permute.xlu1 %139  ;;  %vm63_vm14 = vmor %vm46_vm12, %vm56_vm13  ;;  %vm31_vm12 = vcmp.eq.s32.totalorder %v21_v27, %v1009_v17  ;;  %vm41_vm13 = vcmp.eq.s32.totalorder %v21_v27, %v1015_v20 }
  0x9a   :  { %vm142_vm1 = vcmp.eq.s32.totalorder %v20_v18, %v1043_v25  ;;  %vm144_vm2 = vcmp.eq.s32.totalorder %v22_v21, %v1043_v25  ;;  %vm80_vm3 = vmor %vm63_vm14, %vm73_vm15  ;;  %vm141_vm8 = vcmp.eq.s32.totalorder %v807_v7, %v1043_v25  ;;  %v239_v7 = vld [vmem:[%s1227_s1 + $0x230] sm:$0xff]  ;;  %s774_s1 = smov [#allocation2]  }
  0x9b   :  { %vm149_vm0 = vmor %vm132_vm10, %vm142_vm1  ;;  %vm58_vm1 = vcmp.eq.s32.totalorder %v21_v27, %v1007_v16 }
  0x9c   :  { %v589_v26 = vsel %vm149_vm0, 1.0, %v772_v15  ;;  %vm151_vm5 = vmor %vm134_vm11, %vm144_vm2  ;;  %vm92_vm2 = vcmp.eq.s32.totalorder %v21_v27, %v1023_v22  ;;  %vm109_vm0 = vcmp.eq.s32.totalorder %v21_v27, %v1025_v23 }
  0x9d   :  { %344 = vmatprep.mubr.f32.mxu0 %v589_v26  ;;  %v591_v28 = vsel %vm151_vm5, 1.0, %v772_v15  ;;  %vm97_vm9 = vmor %vm80_vm3, %vm90_vm6  ;;  %vm75_vm6 = vcmp.eq.s32.totalorder %v21_v27, %v1013_v19  ;;  %vm126_vm5 = vcmp.eq.s32.totalorder %v21_v27, %v1033_v24 }
  0x9e   :  { %414 = vmatprep.mubr.f32.mxu1 %v591_v28  ;;  %vm114_vm10 = vmor %vm97_vm9, %vm107_vm4  ;;  %vm143_vm9 = vcmp.eq.s32.totalorder %v21_v27, %v1043_v25 }
  0x9f   :  { %vm131_vm14 = vmor %vm114_vm10, %vm124_vm7  ;;  %vm34_vm10 = vcmp.eq.s32.totalorder %v24_v33, %v1009_v17 }
  0xa0   :  { %vm148_vm11 = vmor %vm131_vm14, %vm141_vm8 }
  0xa1   :  { %v588_v30 = vsel %vm148_vm11, 1.0, %v772_v15  ;;  %vm48_vm15 = vmor %vm31_vm12, %vm41_vm13  ;;  %vm44_vm12 = vcmp.eq.s32.totalorder %v24_v33, %v1015_v20 }
  0xa2   :  { %345 = vmatmul.mubr.f32.vlgmr.msra.gmra.mxu0 %v588_v30  ;;  %vm65_vm3 = vmor %vm48_vm15, %vm58_vm1  ;;  %vm61_vm15 = vcmp.eq.s32.totalorder %v24_v33, %v1007_v16  ;;  %vm95_vm1 = vcmp.eq.s32.totalorder %v24_v33, %v1023_v22 }
  0xa3   :  { %vm82_vm4 = vmor %vm65_vm3, %vm75_vm6  ;;  %668 = vmatpush3.msra.mxu0 %v248_v29  ;;  %vm78_vm3 = vcmp.eq.s32.totalorder %v24_v33, %v1013_v19  ;;  %vm112_vm6 = vcmp.eq.s32.totalorder %v24_v33, %v1025_v23 }
  0xa4   :  { %vm99_vm7 = vmor %vm82_vm4, %vm92_vm2  ;;  %669 = vmatprep.subr.mxu0 %v263_v31  ;;  %vm129_vm4 = vcmp.eq.s32.totalorder %v24_v33, %v1033_v24 }
  0xa5   :  { %vm116_vm8 = vmor %vm99_vm7, %vm109_vm0  ;;  %670 = vmatpush3.msra.mxu0 %v247_v32 }
  0xa6   :  { %vm133_vm13 = vmor %vm116_vm8, %vm126_vm5  ;;  %671 = vmatprep.subr.mxu0 %v262_v34  ;;  %vm773_vm5 = vmmov 0  }
  0xa7   :  { %vm150_vm14 = vmor %vm133_vm13, %vm143_vm9  ;;  %672 = vmatpush3.msra.mxu0 %v246_v35  ;;  %vm146_vm9 = vcmp.eq.s32.totalorder %v24_v33, %v1043_v25 }
  0xa8   :  { %v590_v39 = vsel %vm150_vm14, 1.0, %v772_v15  ;;  %vm51_vm11 = vmor %vm34_vm10, %vm44_vm12  ;;  %673 = vmatprep.subr.mxu0 %v261_v36  ;;  %vm35_vm10 = vcmp.eq.s32.totalorder %v25_v43, %v1009_v17  ;;  %vm45_vm12 = vcmp.eq.s32.totalorder %v25_v43, %v1015_v20 }
  0xa9   :  { %415 = vmatmul.mubr.f32.vlgmr.msra.gmra.mxu1 %v590_v39  ;;  %vm68_vm2 = vmor %vm51_vm11, %vm61_vm15  ;;  %674 = vmatpush3.msra.mxu0 %v245_v37  ;;  %vm62_vm15 = vcmp.eq.s32.totalorder %v25_v43, %v1007_v16 }
  0xaa   :  { %708 = vmatpush3.msra.mxu1 %v268_v38  ;;  %vm85_vm0 = vmor %vm68_vm2, %vm78_vm3  ;;  %715 = vmatprep.mubr.msk.f32.mxu1 %vm773_vm5, %v772_v15  ;;  %vm79_vm3 = vcmp.eq.s32.totalorder %v25_v43, %v1013_v19 }
  0xab   :  { %vm102_vm7 = vmor %vm85_vm0, %vm95_vm1  ;;  %709 = vmatprep.subr.mxu1 %v772_v15  ;;  %675 = vmatprep.subr.mxu0 %v260_v40  ;;  %vm96_vm1 = vcmp.eq.s32.totalorder %v25_v43, %v1023_v22 }
  0xac   :  { %vm119_vm8 = vmor %vm102_vm7, %vm112_vm6  ;;  %710 = vmatpush3.msra.mxu1 %v267_v41  ;;  %676 = vmatpush3.msra.mxu0 %v244_v42  ;;  %vm113_vm6 = vcmp.eq.s32.totalorder %v25_v43, %v1025_v23  ;;  %vm147_vm7 = vcmp.eq.s32.totalorder %v25_v43, %v1043_v25 }
  0xad   :  { %vm136_vm13 = vmor %vm119_vm8, %vm129_vm4  ;;  %711 = vmatprep.subr.mxu1 %v772_v15  ;;  %677 = vmatprep.subr.mxu0 %v259_v44  ;;  %vm130_vm4 = vcmp.eq.s32.totalorder %v25_v43, %v1033_v24  ;;  %vm33_vm8 = vcmp.eq.s32.totalorder %v23_v54, %v1009_v17 }
  0xae   :  { %vm153_vm14 = vmor %vm136_vm13, %vm146_vm9  ;;  %712 = vmatpush3.msra.mxu1 %v266_v45  ;;  %678 = vmatpush3.msra.mxu0 %v243_v46  ;;  %vm276_vm13 = vcmask 261120  }
  0xaf   :  { %v593_v50 = vsel %vm153_vm14, 1.0, %v772_v15  ;;  %713 = vmatprep.subr.mxu1 %v772_v15  ;;  %vm52_vm11 = vmor %vm35_vm10, %vm45_vm12  ;;  %679 = vmatprep.subr.mxu0 %v258_v47  ;;  %vm43_vm10 = vcmp.eq.s32.totalorder %v23_v54, %v1015_v20 }
  0xb0   :  { %484 = vmatprep.mubr.f32.mxu0 %v593_v50  ;;  %714 = vmatpush3.msra.mxu1 %v265_v48  ;;  %vm69_vm2 = vmor %vm52_vm11, %vm62_vm15  ;;  %vm60_vm15 = vcmp.eq.s32.totalorder %v23_v54, %v1007_v16  ;;  %v595_v16 = vld [vmem:[%s1228_s2] ss:$0 sm:$0xff]  ;;  %s580_s2 = sshll.u32 %s774_s1, 4  ;;  %s581_s2 = int_to_ptr.vmem [resolvable:$true] %s580_s2 }
  0xb1   :  { %vm86_vm0 = vmor %vm69_vm2, %vm79_vm3  ;;  %680 = vmatpush3.msra.mxu0 %v242_v49  ;;  %vm94_vm2 = vcmp.eq.s32.totalorder %v23_v54, %v1023_v22  ;;  %vm77_vm3 = vcmp.eq.s32.totalorder %v23_v54, %v1013_v19  ;;  %s742_s20 = scalar_lea.vmem %s581_s2, 32  ;;  %p747_p1 = scmp.lt.s32.totalorder %s581_s2, %s581_s2 }
  0xb2   :  { %vm103_vm5 = vmor %vm86_vm0, %vm96_vm1  ;;  %681 = vmatprep.subr.mxu0 %v257_v51  ;;  %p743_p0 = scmp.ne.s32.totalorder %s581_s2, %s742_s20  ;;  %p748_p2 = scmp.lt.s32.totalorder %s742_s20, %s742_s20 }
  0xb3   :  { %vm120_vm9 = vmor %vm103_vm5, %vm113_vm6  ;;  %682 = vmatpush3.msra.mxu0 %v241_v52  ;;  %vm128_vm5 = vcmp.eq.s32.totalorder %v23_v54, %v1033_v24 }
  0xb4   :  { %vm137_vm12 = vmor %vm120_vm9, %vm130_vm4  ;;  %683 = vmatprep.subr.mxu0 %v256_v53  ;;  %vm111_vm4 = vcmp.eq.s32.totalorder %v23_v54, %v1025_v23  ;;  %p749_p3 = por %p748_p2, %p747_p1 }
  0xb5   :  { %vm154_vm14 = vmor %vm137_vm12, %vm147_vm7  ;;  %684 = vmatpush3.msra.mxu0 %v240_v55  ;;  %vm145_vm7 = vcmp.eq.s32.totalorder %v23_v54, %v1043_v25  ;;  %vm560_vm12 = vcmask 25600  }
  0xb6   :  { %v594_v58 = vsel %vm154_vm14, 1.0, %v772_v15  ;;  %685 = vmatprep.subr.mxu0 %v255_v56  ;;  %vm50_vm11 = vmor %vm33_vm8, %vm43_vm10  ;;  %p750_p4 = pnand %p749_p3, %p743_p0 }
  0xb7   :  { %716 = vmatmul.mubr.msk.f32.vlgmr.msra.gmra.mxu1 %vm276_vm13, %v594_v58  ;;  %686 = vmatpush3.msra.mxu0 %v239_v7  ;;  %vm67_vm1 = vmor %vm50_vm11, %vm60_vm15 }
  0xb8   :  { %687 = vmatprep.subr.mxu0 %v254_v57  ;;  %vm84_vm6 = vmor %vm67_vm1, %vm77_vm3 }
  0xb9   :  { %688 = vmatpush3.msra.mxu0 %v238_v59  ;;  %vm101_vm0 = vmor %vm84_vm6, %vm94_vm2 }
  0xba   :  { %689 = vmatprep.subr.mxu0 %v253_v60  ;;  %vm118_vm9 = vmor %vm101_vm0, %vm111_vm4 }
  0xbb   :  { %690 = vmatpush3.msra.mxu0 %v237_v61  ;;  %vm135_vm8 = vmor %vm118_vm9, %vm128_vm5 }
  0xbc   :  { %691 = vmatprep.subr.mxu0 %v252_v62  ;;  %vm152_vm10 = vmor %vm135_vm8, %vm145_vm7 }
  0xbd   :  { %692 = vmatpush3.msra.mxu0 %v236_v63  ;;  %v592_v6 = vsel %vm152_vm10, 1.0, %v772_v15 }
  0xbe   :  { %693 = vmatprep.subr.mxu0 %v251_v0 }
  0xbf   :  { %694 = vmatpush3.msra.mxu0 %v235_v1 }
  0xc0   :  { %695 = vmatprep.subr.mxu0 %v250_v2 }
  0xc1   :  { %696 = vmatpush3.msra.mxu0 %v234_v3 }
  0xc2   :  { %697 = vmatprep.subr.mxu0 %v249_v4 }
  0xc3   :  { %698 = vmatpush3.msra.mxu0 %v233_v5 }
  0xc4   :  { %485 = vmatmul.mubr.f32.vlgmr.msra.gmra.mxu0 %v592_v6 }
 0x162   :  { %v629_v11 = vpop.f32.mrf.mxu0 }
 0x164   :  { %v630_v13 = vpop.f32.mrf.mxu0 }
 0x165   :  { %v631_v14 = vadd.f32 %v630_v13, %v629_v11 }
 0x167   :  { %v347_v17 = vadd.f32 %v631_v14, %v595_v16 }
 0x169   :  { %v664_v8 = vpop.f32.mrf.mxu1 }
 0x16b   :  { %v665_v9 = vpop.f32.mrf.mxu1 }
 0x16c   :  { %v666_v19 = vadd.f32 %v665_v9, %v664_v8 }
 0x16e   :  { %v417_v21 = vadd.f32 %v666_v19, %v347_v17 }
 0x177   :  { %v556_v10 = vpop.f32.mrf.mxu1 }
 0x179   :  { %v717_v12 = vpop.f32.mrf.mxu1 }
 0x184   :  { %v699_v18 = vpop.f32.mrf.mxu0 }
 0x186   :  { %v700_v20 = vpop.f32.mrf.mxu0 }
 0x187   :  { %v701_v22 = vadd.f32 %v700_v20, %v699_v18 }
 0x189   :  { %v487_v23 = vadd.f32 %v701_v22, %v417_v21 }
 0x18b   :  { %v557_v15 = vadd.f32 %v556_v10, %v487_v23 }
 0x18d   :  { %v561_v24 = vsel %vm560_vm12, %v557_v15, -inf }
 0x18e   :  { %562 = vmax.xlane.f32.xlu0 %v561_v24 }
 0x217   :  { %v563_v25 = vpop.xlane.xlu0 %562 }
 0x218   :  { %v564_v26 = vsub.f32 %v557_v15, %v563_v25 }
 0x21a   :  { %v565_v27 = vmul.f32 1.442695, %v564_v26 }
 0x21c   :  { %738 = vpow2.f32 %v565_v27 }
 0x229   :  { %v739_v28 = vpop.eup %738 }
 0x22a   :  { %v567_v29 = vsel %vm560_vm12, %v739_v28, 0.0 }
 0x22b   :  { %568 = vadd.xlane.f32.xlu1 %v567_v29 }
 0x2b4   :  { %v569_v30 = vpop.xlane.xlu1 %568 }
 0x2b5   :  { %740 = vlog2.f32 %v569_v30 }
 0x2c2   :  { %v741_v31 = vpop.eup %740 }
 0x2c3   :  { %v571_v32 = vmul.f32 0.6931472, %v741_v31 }
 0x2c5   :  { %v572_v33 = vsub.f32 %v564_v26, %v571_v32 }
 0x2c7   :  { %573 = vst.msk [vmem:[#allocation2] sm:$0x3] %vm560_vm12, %v572_v33 }
 0x2c8   :  { %753 = shalt.err (!%p750_p4)
}
 0x2c9   :  { %583 = dma.vmem_to_hbm [thread:$0]  %s581_s2, 32, %s1229_s3, [#allocation3]  }
 0x2ca   :  { %762 = dma.done.wait [#allocation3], 32  }
 0x2cb   :  { %763 = vsyncadd [#allocation3], 4294967264 }
 0x2cc   :  { %587 = vsyncpa [#allocation3], 1 }

</bundles_post_ra>
